<compile_context>
chip_gen: v6e
topology: v6e:2x2x1
jax: 0.10.0
libtpu: 0.0.40
codegen_flags: <defaults>
</compile_context>

<pallas_src>
import functools

import jax
import jax.numpy as jnp
from jax.experimental import pallas as pl
from jax.experimental.pallas import tpu as pltpu

LANES = 128
MAX_TILE_ROWS = 2048      # (2048, 128) f32 block = 1 MiB per input
NUM_SHARDS = 2            # leading "parallel" grid axis (2 TCs on v7x)


def _mape_partial_kernel(yt_ref, yp_ref, out_ref, *, tile_rows,
                         steps_per_shard, rows_valid, needs_mask):
    """Accumulate per-shard (8, 128) partial sums of abs((yt - yp) / yt)."""
    c = pl.program_id(0)   # shard (parallel)
    i = pl.program_id(1)   # step within shard (arbitrary / reduction axis)

    @pl.when(i == 0)
    def _():
        out_ref[...] = jnp.zeros_like(out_ref)

    yt = yt_ref[...]
    yp = yp_ref[...]
    # Exact division; y_true == 0 -> inf/nan, same as the PyTorch module.
    ape = jnp.abs((yt - yp) / yt)

    if needs_mask:
        # Zero rows past the valid extent (ragged last block and any
        # fully-empty trailing blocks of the last shard).  The unselected
        # branch may hold garbage/inf/nan from the clipped DMA; jnp.where
        # drops it.
        step = c * steps_per_shard + i
        row0 = step * tile_rows
        row_idx = jax.lax.broadcasted_iota(
            jnp.int32, (tile_rows, LANES), 0) + row0
        ape = jnp.where(row_idx < rows_valid, ape, 0.0)

    # Fold (tile_rows, 128) -> (8, 128) with pure vector adds (no XLU work in
    # the hot loop); the final cross-lane reduce happens once, in JAX.
    part = jnp.sum(ape.reshape(tile_rows // 8, 8, LANES), axis=0)
    out_ref[...] += part


def mape_loss(y_pred, y_true):
    """MAPE loss matching torch.mean(torch.abs((y_true - y_pred)/y_true))*100."""
    y_pred = jnp.asarray(y_pred, jnp.float32)
    y_true = jnp.asarray(y_true, jnp.float32)
    assert y_pred.shape == y_true.shape

    n = y_pred.size
    yp_flat = y_pred.reshape(-1)
    yt_flat = y_true.reshape(-1)

    rows = n // LANES
    rows8 = (rows // 8) * 8          # rows handled by the Pallas kernel
    n_main = rows8 * LANES

    total = jnp.float32(0.0)

    if rows8 > 0:
        # Unpadded prefix views -- no padded concatenate copy.
        yp2d = yp_flat[:n_main].reshape(rows8, LANES)
        yt2d = yt_flat[:n_main].reshape(rows8, LANES)

        tile_rows = min(MAX_TILE_ROWS, rows8)          # multiple of 8
        num_blocks = -(-rows8 // tile_rows)            # cdiv
        num_shards = NUM_SHARDS if num_blocks >= NUM_SHARDS else 1
        steps_per_shard = -(-num_blocks // num_shards)
        last_block = num_blocks - 1
        needs_mask = (num_shards * steps_per_shard * tile_rows) != rows8

        def in_index_map(c, i):
            # Clamp so trailing (empty) steps re-read the last valid block;
            # the in-kernel row mask zeroes their contribution.
            return (jnp.minimum(c * steps_per_shard + i, last_block), 0)

        kernel = functools.partial(
            _mape_partial_kernel,
            tile_rows=tile_rows,
            steps_per_shard=steps_per_shard,
            rows_valid=rows8,
            needs_mask=needs_mask,
        )

        partials = pl.pallas_call(
            kernel,
            out_shape=jax.ShapeDtypeStruct((num_shards, 8, LANES), jnp.float32),
            grid_spec=pltpu.PrefetchScalarGridSpec(
                num_scalar_prefetch=0,
                grid=(num_shards, steps_per_shard),
                in_specs=[
                    pl.BlockSpec((tile_rows, LANES), in_index_map),
                    pl.BlockSpec((tile_rows, LANES), in_index_map),
                ],
                out_specs=pl.BlockSpec((None, 8, LANES), lambda c, i: (c, 0, 0)),
            ),
            compiler_params=pltpu.CompilerParams(
                dimension_semantics=("parallel", "arbitrary"),
            ),
        )(yt2d, yp2d)

        total = total + jnp.sum(partials)

    if n_main < n:
        # Ragged tail (< 1024 elements): plain JAX, avoids any padded copy.
        yt_tail = yt_flat[n_main:]
        yp_tail = yp_flat[n_main:]
        total = total + jnp.sum(jnp.abs((yt_tail - yp_tail) / yt_tail))

    # Scalar epilogue: mean over the true element count, times 100.
    return (total / jnp.float32(n)) * jnp.float32(100.0)


if __name__ == "__main__":
    key = jax.random.PRNGKey(0)
    k1, k2, k3, k4 = jax.random.split(key, 4)

    # Small NCHW example matching the PyTorch call site; y_true kept away from 0.
    shape = (2, 4, 16, 16)
    y_true = jax.random.uniform(k1, shape, jnp.float32, minval=0.5, maxval=2.0)
    y_pred = y_true + 0.1 * jax.random.normal(k2, shape, jnp.float32)

    loss = mape_loss(y_pred, y_true)
    jax.block_until_ready(loss)

    ref = jnp.mean(jnp.abs((y_true - y_pred) / y_true)) * 100.0
    assert jnp.allclose(loss, ref, rtol=1e-5, atol=1e-5), (loss, ref)

    # Secondary check: larger shape that exercises the multi-block / sharded /
    # masked-boundary path (2600 rows -> two partial shards).
    shape2 = (5, 4, 128, 130)
    y_true2 = jax.random.uniform(k3, shape2, jnp.float32, minval=0.5, maxval=2.0)
    y_pred2 = y_true2 + 0.1 * jax.random.normal(k4, shape2, jnp.float32)

    loss2 = mape_loss(y_pred2, y_true2)
    jax.block_until_ready(loss2)
    ref2 = jnp.mean(jnp.abs((y_true2 - y_pred2) / y_true2)) * 100.0
    assert jnp.allclose(loss2, ref2, rtol=1e-5, atol=1e-5), (loss2, ref2)

    print("KERNEL_OK")
</pallas_src>

<mosaic_0001>
module attributes {stable_mosaic.version = 11 : i64} {
  func.func @_mape_partial_kernel(%arg0: i32, %arg1: i32, %arg2: memref<16x128xf32, #tpu.memory_space<vmem>>, %arg3: memref<16x128xf32, #tpu.memory_space<vmem>>, %arg4: memref<1x8x128xf32, #tpu.memory_space<vmem>>) attributes {dimension_semantics = [#tpu.dimension_semantics<parallel>, #tpu.dimension_semantics<arbitrary>], iteration_bounds = array<i64: 1, 1>, scalar_prefetch = 0 : i64, scratch_operands = 0 : i64, tpu.core_type = #tpu.core_type<tc>, window_params = [{transform_indices = @transform_0, window_bounds = array<i64: 16, 128>}, {transform_indices = @transform_1, window_bounds = array<i64: 16, 128>}, {transform_indices = @transform_2, window_bounds = array<i64: 1, 8, 128>}]} {
    %c0_i32 = arith.constant 0 : i32
    %0 = arith.cmpi eq, %arg1, %c0_i32 : i32
    %1 = arith.extui %0 : i1 to i32
    %c0_i32_0 = arith.constant 0 : i32
    %2 = arith.cmpi ne, %1, %c0_i32_0 : i32
    scf.if %2 {
      %cst_10 = arith.constant 0.000000e+00 : f32
      %16 = vector.broadcast %cst_10 : f32 to vector<8x128xf32>
      %c0_11 = arith.constant 0 : index
      %c0_12 = arith.constant 0 : index
      %c0_13 = arith.constant 0 : index
      %17 = vector.load %arg4[%c0_11, %c0_12, %c0_13] : memref<1x8x128xf32, #tpu.memory_space<vmem>>, vector<1x8x128xf32>
      %18 = vector.shape_cast %17 : vector<1x8x128xf32> to vector<8x128xf32>
      %19 = vector.shape_cast %16 : vector<8x128xf32> to vector<1x8x128xf32>
      tpu.vector_store %arg4[%c0_11, %c0_12, %c0_13], %19 {strides = array<i32>} : memref<1x8x128xf32, #tpu.memory_space<vmem>>, vector<1x8x128xf32>,
    } else {
    }
    %c0 = arith.constant 0 : index
    %c0_1 = arith.constant 0 : index
    %3 = vector.load %arg2[%c0, %c0_1] : memref<16x128xf32, #tpu.memory_space<vmem>>, vector<16x128xf32>
    %c0_2 = arith.constant 0 : index
    %c0_3 = arith.constant 0 : index
    %4 = vector.load %arg3[%c0_2, %c0_3] : memref<16x128xf32, #tpu.memory_space<vmem>>, vector<16x128xf32>
    %5 = arith.subf %3, %4 : vector<16x128xf32>
    %6 = arith.divf %5, %3 : vector<16x128xf32>
    %7 = math.absf %6 : vector<16x128xf32>
    %8 = vector.shape_cast %7 : vector<16x128xf32> to vector<2x8x128xf32>
    %cst = arith.constant dense<0.000000e+00> : vector<8x128xf32>
    %9 = vector.multi_reduction <add>, %8, %cst [0] : vector<2x8x128xf32> to vector<8x128xf32>
    %c0_4 = arith.constant 0 : index
    %c0_5 = arith.constant 0 : index
    %c0_6 = arith.constant 0 : index
    %10 = vector.load %arg4[%c0_4, %c0_5, %c0_6] : memref<1x8x128xf32, #tpu.memory_space<vmem>>, vector<1x8x128xf32>
    %11 = vector.shape_cast %10 : vector<1x8x128xf32> to vector<8x128xf32>
    %12 = arith.addf %11, %9 : vector<8x128xf32>
    %c0_7 = arith.constant 0 : index
    %c0_8 = arith.constant 0 : index
    %c0_9 = arith.constant 0 : index
    %13 = vector.load %arg4[%c0_7, %c0_8, %c0_9] : memref<1x8x128xf32, #tpu.memory_space<vmem>>, vector<1x8x128xf32>
    %14 = vector.shape_cast %13 : vector<1x8x128xf32> to vector<8x128xf32>
    %15 = vector.shape_cast %12 : vector<8x128xf32> to vector<1x8x128xf32>
    tpu.vector_store %arg4[%c0_7, %c0_8, %c0_9], %15 {strides = array<i32>} : memref<1x8x128xf32, #tpu.memory_space<vmem>>, vector<1x8x128xf32>,
    return
  }
  func.func @transform_0(%arg0: i32, %arg1: i32) -> (i32, i32) {
    %c1_i32 = arith.constant 1 : i32
    %0 = arith.muli %arg0, %c1_i32 : i32
    %1 = arith.addi %0, %arg1 : i32
    %c0_i32 = arith.constant 0 : i32
    %2 = arith.minsi %1, %c0_i32 : i32
    %c0_i32_0 = arith.constant 0 : i32
    %c0_i32_1 = arith.constant 0 : i32
    return %2, %c0_i32_0 : i32, i32
  }
  func.func @transform_1(%arg0: i32, %arg1: i32) -> (i32, i32) {
    %c1_i32 = arith.constant 1 : i32
    %0 = arith.muli %arg0, %c1_i32 : i32
    %1 = arith.addi %0, %arg1 : i32
    %c0_i32 = arith.constant 0 : i32
    %2 = arith.minsi %1, %c0_i32 : i32
    %c0_i32_0 = arith.constant 0 : i32
    %c0_i32_1 = arith.constant 0 : i32
    return %2, %c0_i32_0 : i32, i32
  }
  func.func @transform_2(%arg0: i32, %arg1: i32) -> (i32, i32, i32) {
    %c0_i32 = arith.constant 0 : i32
    %c0_i32_0 = arith.constant 0 : i32
    %c0_i32_1 = arith.constant 0 : i32
    return %arg0, %c0_i32, %c0_i32_0 : i32, i32, i32
  }
}

</mosaic_0001>

<bundles_post_ra>
// kernel: tpu_custom_call.1
= control target key start
LH: loop header
LB: loop body
LE: loop exit
PB: predicated region body
PF: predicated region fallthrough
CT: control target
= control target key end

     0   :  { %7 = vsyncpa [#allocation3], 0  ;;  %s206_s0 = inlined_call_operand.hbm [shape: f32[16,128], index: 0, kind: input, shape index: {}]   ;;  %s207_s1 = inlined_call_operand.hbm [shape: f32[16,128], index: 1, kind: input, shape index: {}]   ;;  %s208_s2 = inlined_call_operand.hbm [shape: f32[1,8,128], index: 2, kind: output, shape index: {}]  }
   0x1   :  { %8 = vsyncpa [#allocation6], 0 }
   0x2   :  { %9 = vsyncpa [#allocation4], 0  ;;  %s177_s9 = smov [#allocation2]  }
   0x3   :  { %s21_s10 = sshll.u32 %s177_s9, 4  ;;  %s22_s10 = int_to_ptr.vmem [resolvable:$true] %s21_s10 }
   0x4   :  { %s119_s11 = scalar_lea.vmem %s22_s10, 256  ;;  %p124_p1 = scmp.lt.s32.totalorder %s22_s10, %s22_s10 }
   0x5   :  { %p120_p0 = scmp.ne.s32.totalorder %s22_s10, %s119_s11  ;;  %p125_p2 = scmp.lt.s32.totalorder %s119_s11, %s119_s11 }
   0x7   :  { %p126_p3 = por %p125_p2, %p124_p1 }
   0x9   :  { %p127_p4 = pnand %p126_p3, %p120_p0 }
   0xb   :  { %130 = shalt.err (!%p127_p4)
}
   0xc   :  { %s178_s12 = smov 128   ;;  %s179_s13 = smov 8  }
   0xd   :  { %27 = dma.hbm_to_vmem [thread:$0]  %s206_s0, 256, %s22_s10, [#allocation3], %s178_s12, %s178_s12, %s179_s13  }
   0xe   :  { %s180_s16 = smov [#allocation5]  }
   0xf   :  { %s39_s17 = sshll.u32 %s180_s16, 4  ;;  %s40_s17 = int_to_ptr.vmem [resolvable:$true] %s39_s17 }
  0x10   :  { %s139_s18 = scalar_lea.vmem %s40_s17, 256  ;;  %p144_p6 = scmp.lt.s32.totalorder %s40_s17, %s40_s17 }
  0x11   :  { %p140_p5 = scmp.ne.s32.totalorder %s40_s17, %s139_s18  ;;  %p145_p7 = scmp.lt.s32.totalorder %s139_s18, %s139_s18 }
  0x13   :  { %p146_p8 = por %p145_p7, %p144_p6 }
  0x15   :  { %p147_p9 = pnand %p146_p8, %p140_p5 }
  0x17   :  { %150 = shalt.err (!%p147_p9)
}
  0x18   :  { %45 = dma.hbm_to_vmem [thread:$0]  %s207_s1, 256, %s40_s17, [#allocation6], %s178_s12, %s178_s12, %s179_s13  }
  0x19   :  { %171 = dma.done.wait [#allocation3], 256  }
  0x1a   :  { %172 = vsyncadd [#allocation3], 4294967040 }
  0x1b   :  { %173 = dma.done.wait [#allocation6], 256  }
  0x1c   :  { %174 = vsyncadd [#allocation6], 4294967040  ;;  %v65_v0 = vld [vmem:[#allocation2] sm:$0xff]  ;;  %v66_v1 = vld [vmem:[#allocation2 + $0x8] sm:$0xff]  ;;  %s181_s0 = smov [#allocation7]  }
  0x1d   :  { %107 = vrcp.f32 %v65_v0  ;;  %v67_v2 = vld [vmem:[#allocation5] sm:$0xff]  ;;  %v68_v3 = vld [vmem:[#allocation5 + $0x8] sm:$0xff]  ;;  %s87_s1 = sshll.u32 %s181_s0, 4  ;;  %s88_s1 = int_to_ptr.vmem [resolvable:$true] %s87_s1 }
  0x1e   :  { %109 = vrcp.f32 %v66_v1  ;;  %v69_v4 = vsub.f32 %v65_v0, %v67_v2  ;;  %v70_v5 = vsub.f32 %v66_v1, %v68_v3  ;;  %s151_s21 = scalar_lea.vmem %s88_s1, 128  ;;  %p156_p11 = scmp.lt.s32.totalorder %s88_s1, %s88_s1 }
  0x1f   :  { %p152_p10 = scmp.ne.s32.totalorder %s88_s1, %s151_s21  ;;  %p157_p12 = scmp.lt.s32.totalorder %s151_s21, %s151_s21 }
  0x21   :  { %p158_p13 = por %p157_p12, %p156_p11 }
  0x23   :  { %p159_p0 = pnand %p158_p13, %p152_p10 }
  0x2a   :  { %v108_v6 = vpop.eup %107 }
  0x2b   :  { %v110_v7 = vpop.eup %109  ;;  %v72_v8 = vmul.f32 %v108_v6, %v69_v4 }
  0x2c   :  { %v74_v9 = vmul.f32 %v110_v7, %v70_v5 }
  0x2d   :  { %v75_v10 = vand.u32 2147483647, %v72_v8 }
  0x2e   :  { %v76_v11 = vand.u32 2147483647, %v74_v9 }
  0x30   :  { %v77_v12 = vadd.f32 %v76_v11, %v75_v10 }
  0x32   :  { %80 = vst [vmem:[#allocation7] sm:$0xff] %v77_v12 }
  0x33   :  { %162 = shalt.err (!%p159_p0)
}
  0x34   :  { %90 = dma.vmem_to_hbm [thread:$0]  %s88_s1, 128, %s208_s2, [#allocation4]  }
  0x35   :  { %175 = dma.done.wait [#allocation4], 128  }
  0x36   :  { %176 = vsyncadd [#allocation4], 4294967168 }
  0x37   :  { %94 = vsyncpa [#allocation3], 1 }
  0x38   :  { %95 = vsyncpa [#allocation6], 1 }
  0x39   :  { %96 = vsyncpa [#allocation4], 1 }

</bundles_post_ra>
